<compile_context>
chip_gen: v5e
topology: v5e:2x2
jax: 0.10.0
libtpu: 0.0.40
codegen_flags: <defaults>
</compile_context>

<pallas_src>
import jax
import jax.numpy as jnp
from jax.experimental import pallas as pl
from jax.experimental.pallas import tpu as pltpu


def _round_up(x, m):
    return ((x + m - 1) // m) * m


def _mlp_kernel(x_ref, w1_ref, b1_ref, w2_ref, b2_ref, o_ref, acc_ref):
    # x_ref:  (TB, INp)    w1_ref: (INp, TH)    b1_ref: (1, TH)
    # w2_ref: (TH, OUTp)   b2_ref: (1, OUTp)    o_ref:  (TB, OUTp)
    # acc_ref: (TB, OUTp) f32 scratch, persistent across the hidden axis.
    k = pl.program_id(1)

    @pl.when(k == 0)
    def _init():
        # Fold the fc2 bias into the accumulator init (once per batch tile).
        acc_ref[...] = jnp.broadcast_to(
            b2_ref[...].astype(jnp.float32), acc_ref.shape
        )

    # fc1 slab -> bias + ReLU in f32 on the VPU.
    h = jnp.dot(x_ref[...], w1_ref[...], preferred_element_type=jnp.float32)
    h = jnp.maximum(h + b1_ref[...].astype(jnp.float32), 0.0)

    # fc2 slab, accumulated in f32.
    acc_ref[...] += jnp.dot(
        h.astype(w2_ref.dtype), w2_ref[...], preferred_element_type=jnp.float32
    )

    @pl.when(k == pl.num_programs(1) - 1)
    def _finalize():
        o_ref[...] = acc_ref[...].astype(o_ref.dtype)


def mlp_forward(x, w1, b1, w2, b2, *, tile_b=None, tile_h=None,
                compute_dtype=None):
    """PyTorch-style MLP forward: relu(x @ w1.T + b1) @ w2.T + b2.

    x: (B, IN); w1: (HID, IN); b1: (HID,); w2: (OUT, HID); b2: (OUT,).
    compute_dtype: e.g. jnp.bfloat16 on v6e/v7x for MXU throughput (accum f32).
    """
    B, IN = x.shape
    HID, IN_w = w1.shape
    OUT, HID_w = w2.shape
    assert IN_w == IN and HID_w == HID
    assert b1.shape == (HID,) and b2.shape == (OUT,)

    out_dtype = x.dtype
    cdt = jnp.dtype(compute_dtype) if compute_dtype is not None else jnp.dtype(x.dtype)

    # ---- Tile selection --------------------------------------------------
    sub = 16 if cdt.itemsize < 4 else 8            # sublane granularity
    if tile_b is None:
        tile_b = min(256, _round_up(B, sub))       # cap batch tile; keep grid long
    assert tile_b % sub == 0
    B_p = _round_up(B, tile_b)

    IN_p = _round_up(IN, 128)
    HID_p = _round_up(HID, 128)
    OUT_p = _round_up(OUT, 128)                    # lane-dense output block

    if tile_h is None:
        tile_h = 128
        for cand in (512, 384, 256, 128):
            if HID_p % cand == 0:
                tile_h = cand
                break
    assert tile_h % 128 == 0 and HID_p % tile_h == 0

    # ---- Zero-pad to tile/lane-aligned shapes (glue, outside the kernel) --
    xp = jnp.zeros((B_p, IN_p), cdt).at[:B, :IN].set(x.astype(cdt))
    w1t = jnp.zeros((IN_p, HID_p), cdt).at[:IN, :HID].set(w1.T.astype(cdt))
    w2t = jnp.zeros((HID_p, OUT_p), cdt).at[:HID, :OUT].set(w2.T.astype(cdt))
    b1p = jnp.zeros((1, HID_p), jnp.float32).at[0, :HID].set(b1.astype(jnp.float32))
    b2p = jnp.zeros((1, OUT_p), jnp.float32).at[0, :OUT].set(b2.astype(jnp.float32))

    grid = (B_p // tile_b, HID_p // tile_h)

    # ---- VMEM budget (every pipelined input is double-buffered) -----------
    csz = cdt.itemsize
    fp = 2 * (tile_b * IN_p + IN_p * tile_h + tile_h * OUT_p) * csz   # x, w1, w2
    fp += 2 * (tile_h + OUT_p) * 4                                    # biases
    fp += 2 * tile_b * OUT_p * jnp.dtype(out_dtype).itemsize          # output
    fp += tile_b * OUT_p * 4                                          # acc scratch
    fp += tile_b * tile_h * 4                                         # h intermediate
    vmem_limit = int(min(max(int(1.25 * fp) + (4 << 20), 16 << 20), 64 << 20))

    out_p = pl.pallas_call(
        _mlp_kernel,
        out_shape=jax.ShapeDtypeStruct((B_p, OUT_p), out_dtype),
        grid=grid,
        in_specs=[
            pl.BlockSpec((tile_b, IN_p), lambda i, k: (i, 0)),   # x tile
            pl.BlockSpec((IN_p, tile_h), lambda i, k: (0, k)),   # W1 slab (streams)
            pl.BlockSpec((1, tile_h), lambda i, k: (0, k)),      # b1 slab
            pl.BlockSpec((tile_h, OUT_p), lambda i, k: (k, 0)),  # W2 slab (streams)
            pl.BlockSpec((1, OUT_p), lambda i, k: (0, 0)),       # b2 (init only)
        ],
        out_specs=pl.BlockSpec((tile_b, OUT_p), lambda i, k: (i, 0)),
        scratch_shapes=[pltpu.VMEM((tile_b, OUT_p), jnp.float32)],
        compiler_params=pltpu.CompilerParams(
            dimension_semantics=("parallel", "arbitrary"),
            vmem_limit_bytes=vmem_limit,
        ),
    )(xp, w1t, b1p, w2t, b2p)

    return out_p[:B, :OUT]


if __name__ == "__main__":
    key = jax.random.PRNGKey(0)

    def make(B, IN, HID, OUT, k):
        kx, k1, kb1, k2, kb2 = jax.random.split(k, 5)
        x = jax.random.normal(kx, (B, IN), dtype=jnp.float32)
        w1 = jax.random.normal(k1, (HID, IN), dtype=jnp.float32) * 0.1
        b1 = jax.random.normal(kb1, (HID,), dtype=jnp.float32) * 0.1
        w2 = jax.random.normal(k2, (OUT, HID), dtype=jnp.float32) * 0.1
        b2 = jax.random.normal(kb2, (OUT,), dtype=jnp.float32) * 0.1
        return x, w1, b1, w2, b2

    def ref(x, w1, b1, w2, b2):
        return jnp.maximum(x @ w1.T + b1, 0.0) @ w2.T + b2

    # 1) Small shapes consistent with the module: batch=8, in=32, hid=64, out=16.
    ka, kb = jax.random.split(key)
    args = make(8, 32, 64, 16, ka)
    out = jax.block_until_ready(mlp_forward(*args))
    assert out.shape == (8, 16)
    assert jnp.allclose(out, ref(*args), atol=1e-4, rtol=1e-4)

    # 2) Exercise the multi-tile grid (2 batch tiles x 2 hidden slabs) + accumulator.
    args2 = make(16, 96, 256, 24, kb)
    out2 = jax.block_until_ready(mlp_forward(*args2, tile_b=8, tile_h=128))
    assert out2.shape == (16, 24)
    assert jnp.allclose(out2, ref(*args2), atol=1e-4, rtol=1e-4)

    print("KERNEL_OK")
</pallas_src>

<mosaic_0001>
module attributes {stable_mosaic.version = 11 : i64} {
  func.func @_mlp_kernel(%arg0: i32, %arg1: i32, %arg2: memref<8x128xf32, #tpu.memory_space<vmem>>, %arg3: memref<128x128xf32, #tpu.memory_space<vmem>>, %arg4: memref<1x128xf32, #tpu.memory_space<vmem>>, %arg5: memref<128x128xf32, #tpu.memory_space<vmem>>, %arg6: memref<1x128xf32, #tpu.memory_space<vmem>>, %arg7: memref<8x128xf32, #tpu.memory_space<vmem>>, %arg8: memref<8x128xf32, #tpu.memory_space<vmem>>) attributes {dimension_semantics = [#tpu.dimension_semantics<parallel>, #tpu.dimension_semantics<arbitrary>], iteration_bounds = array<i64: 1, 1>, scalar_prefetch = 0 : i64, scratch_operands = 1 : i64, tpu.core_type = #tpu.core_type<tc>, window_params = [{transform_indices = @transform_0, window_bounds = array<i64: 8, 128>}, {transform_indices = @transform_1, window_bounds = array<i64: 128, 128>}, {transform_indices = @transform_2, window_bounds = array<i64: 1, 128>}, {transform_indices = @transform_3, window_bounds = array<i64: 128, 128>}, {pipeline_mode = #tpu.pipeline_mode<synchronous>, transform_indices = @transform_4, window_bounds = array<i64: 1, 128>}, {transform_indices = @transform_5, window_bounds = array<i64: 8, 128>}]} {
    %c0_i32 = arith.constant 0 : i32
    %0 = arith.cmpi eq, %arg1, %c0_i32 : i32
    %1 = arith.extui %0 : i1 to i32
    %c0_i32_0 = arith.constant 0 : i32
    %2 = arith.cmpi ne, %1, %c0_i32_0 : i32
    scf.if %2 {
      %c0_16 = arith.constant 0 : index
      %c0_17 = arith.constant 0 : index
      %19 = vector.load %arg6[%c0_16, %c0_17] : memref<1x128xf32, #tpu.memory_space<vmem>>, vector<1x128xf32>
      %20 = vector.shape_cast %19 : vector<1x128xf32> to vector<1x128xf32>
      %21 = vector.broadcast %20 : vector<1x128xf32> to vector<8x128xf32>
      %c0_18 = arith.constant 0 : index
      %c0_19 = arith.constant 0 : index
      %22 = vector.load %arg8[%c0_18, %c0_19] : memref<8x128xf32, #tpu.memory_space<vmem>>, vector<8x128xf32>
      tpu.vector_store %arg8[%c0_18, %c0_19], %21 {strides = array<i32>} : memref<8x128xf32, #tpu.memory_space<vmem>>, vector<8x128xf32>,
    } else {
    }
    %c0 = arith.constant 0 : index
    %c0_1 = arith.constant 0 : index
    %3 = vector.load %arg2[%c0, %c0_1] : memref<8x128xf32, #tpu.memory_space<vmem>>, vector<8x128xf32>
    %c0_2 = arith.constant 0 : index
    %c0_3 = arith.constant 0 : index
    %4 = vector.load %arg3[%c0_2, %c0_3] : memref<128x128xf32, #tpu.memory_space<vmem>>, vector<128x128xf32>
    %cst = arith.constant dense<0.000000e+00> : vector<8x128xf32>
    %5 = tpu.matmul %3, %4, %cst {dimension_numbers = #tpu.dot_dimension_numbers<[1], [0], [0], [1], [0, 0, 1, 1], [], []>} : vector<8x128xf32>, vector<128x128xf32>, vector<8x128xf32> -> vector<8x128xf32>
    %c0_4 = arith.constant 0 : index
    %c0_5 = arith.constant 0 : index
    %6 = vector.load %arg4[%c0_4, %c0_5] : memref<1x128xf32, #tpu.memory_space<vmem>>, vector<1x128xf32>
    %7 = vector.broadcast %6 : vector<1x128xf32> to vector<8x128xf32>
    %8 = arith.addf %5, %7 : vector<8x128xf32>
    %cst_6 = arith.constant 0.000000e+00 : f32
    %9 = vector.broadcast %cst_6 : f32 to vector<8x128xf32>
    %10 = arith.maximumf %8, %9 : vector<8x128xf32>
    %c0_7 = arith.constant 0 : index
    %c0_8 = arith.constant 0 : index
    %11 = vector.load %arg8[%c0_7, %c0_8] : memref<8x128xf32, #tpu.memory_space<vmem>>, vector<8x128xf32>
    %c0_9 = arith.constant 0 : index
    %c0_10 = arith.constant 0 : index
    %12 = vector.load %arg5[%c0_9, %c0_10] : memref<128x128xf32, #tpu.memory_space<vmem>>, vector<128x128xf32>
    %cst_11 = arith.constant dense<0.000000e+00> : vector<8x128xf32>
    %13 = tpu.matmul %10, %12, %cst_11 {dimension_numbers = #tpu.dot_dimension_numbers<[1], [0], [0], [1], [0, 0, 1, 1], [], []>} : vector<8x128xf32>, vector<128x128xf32>, vector<8x128xf32> -> vector<8x128xf32>
    %14 = arith.addf %11, %13 : vector<8x128xf32>
    %c0_12 = arith.constant 0 : index
    %c0_13 = arith.constant 0 : index
    %15 = vector.load %arg8[%c0_12, %c0_13] : memref<8x128xf32, #tpu.memory_space<vmem>>, vector<8x128xf32>
    tpu.vector_store %arg8[%c0_12, %c0_13], %14 {strides = array<i32>} : memref<8x128xf32, #tpu.memory_space<vmem>>, vector<8x128xf32>,
    %c0_i32_14 = arith.constant 0 : i32
    %16 = arith.cmpi eq, %arg1, %c0_i32_14 : i32
    %17 = arith.extui %16 : i1 to i32
    %c0_i32_15 = arith.constant 0 : i32
    %18 = arith.cmpi ne, %17, %c0_i32_15 : i32
    scf.if %18 {
      %c0_16 = arith.constant 0 : index
      %c0_17 = arith.constant 0 : index
      %19 = vector.load %arg8[%c0_16, %c0_17] : memref<8x128xf32, #tpu.memory_space<vmem>>, vector<8x128xf32>
      %c0_18 = arith.constant 0 : index
      %c0_19 = arith.constant 0 : index
      %20 = vector.load %arg7[%c0_18, %c0_19] : memref<8x128xf32, #tpu.memory_space<vmem>>, vector<8x128xf32>
      tpu.vector_store %arg7[%c0_18, %c0_19], %19 {strides = array<i32>} : memref<8x128xf32, #tpu.memory_space<vmem>>, vector<8x128xf32>,
    } else {
    }
    return
  }
  func.func @transform_0(%arg0: i32, %arg1: i32) -> (i32, i32) {
    %c0_i32 = arith.constant 0 : i32
    %c0_i32_0 = arith.constant 0 : i32
    return %arg0, %c0_i32 : i32, i32
  }
  func.func @transform_1(%arg0: i32, %arg1: i32) -> (i32, i32) {
    %c0_i32 = arith.constant 0 : i32
    %c0_i32_0 = arith.constant 0 : i32
    return %c0_i32, %arg1 : i32, i32
  }
  func.func @transform_2(%arg0: i32, %arg1: i32) -> (i32, i32) {
    %c0_i32 = arith.constant 0 : i32
    %c0_i32_0 = arith.constant 0 : i32
    return %c0_i32, %arg1 : i32, i32
  }
  func.func @transform_3(%arg0: i32, %arg1: i32) -> (i32, i32) {
    %c0_i32 = arith.constant 0 : i32
    %c0_i32_0 = arith.constant 0 : i32
    return %arg1, %c0_i32 : i32, i32
  }
  func.func @transform_4(%arg0: i32, %arg1: i32) -> (i32, i32) {
    %c0_i32 = arith.constant 0 : i32
    %c0_i32_0 = arith.constant 0 : i32
    %c0_i32_1 = arith.constant 0 : i32
    return %c0_i32, %c0_i32_0 : i32, i32
  }
  func.func @transform_5(%arg0: i32, %arg1: i32) -> (i32, i32) {
    %c0_i32 = arith.constant 0 : i32
    %c0_i32_0 = arith.constant 0 : i32
    return %arg0, %c0_i32 : i32, i32
  }
}

</mosaic_0001>

<bundles_post_ra>
// kernel: tpu_custom_call.1
= control target key start
LH: loop header
LB: loop body
LE: loop exit
PB: predicated region body
PF: predicated region fallthrough
CT: control target
= control target key end

     0   :  { %10 = vsyncpa [#allocation4], 0  ;;  %s343_s0 = inlined_call_operand.hbm [shape: f32[8,128], index: 0, kind: input, shape index: {}]   ;;  %s344_s1 = inlined_call_operand.hbm [shape: f32[128,128], index: 1, kind: input, shape index: {}]   ;;  %s345_s2 = inlined_call_operand.vmem [shape: f32[1,128], index: 2, kind: input, shape index: {}]   ;;  %s346_s3 = inlined_call_operand.hbm [shape: f32[128,128], index: 3, kind: input, shape index: {}]   ;;  %s347_s4 = inlined_call_operand.vmem [shape: f32[1,128], index: 4, kind: input, shape index: {}]   ;;  %s348_s5 = inlined_call_operand.hbm [shape: f32[8,128], index: 5, kind: output, shape index: {}]  }
   0x1   :  { %11 = vsyncpa [#allocation7], 0  ;;  %s28_s20 = sshll.u32 %s344_s1, 4  ;;  %s29_s20 = int_to_ptr.hbm [resolvable:$true] %s28_s20 }
   0x2   :  { %12 = vsyncpa [#allocation5], 0  ;;  %s289_s21 = smov [#allocation6]   ;;  %s18_s25 = sshll.u32 %s343_s0, 4  ;;  %s19_s25 = int_to_ptr.hbm [resolvable:$true] %s18_s25 }
   0x3   :  { %s30_s22 = sshll.u32 %s289_s21, 4  ;;  %s290_s26 = smov 128   ;;  %s31_s22 = int_to_ptr.vmem [resolvable:$true] %s30_s22 }
   0x4   :  { %s291_s27 = smov 8   ;;  %s292_s28 = smov [#allocation3]  }
   0x5   :  { %36 = dma.hbm_to_vmem [thread:$0]  %s29_s20, 2048, %s31_s22, [#allocation7], %s290_s26, %s290_s26, %s291_s27  }
   0x6   :  { %s20_s29 = sshll.u32 %s292_s28, 4  ;;  %s43_s7 = sshll.u32 %s346_s3, 4  ;;  %s21_s29 = int_to_ptr.vmem [resolvable:$true] %s20_s29  ;;  %s44_s7 = int_to_ptr.hbm [resolvable:$true] %s43_s7 }
   0x7   :  { %23 = dma.hbm_to_vmem [thread:$0]  %s19_s25, 128, %s21_s29, [#allocation4]  }
   0x8   :  { %s293_s1 = smov [#allocation8]  }
   0x9   :  { %s45_s8 = sshll.u32 %s293_s1, 4  ;;  %s46_s8 = int_to_ptr.vmem [resolvable:$true] %s45_s8 }
   0xa   :  { %51 = dma.hbm_to_vmem [thread:$0]  %s44_s7, 2048, %s46_s8, [#allocation7], %s290_s26, %s290_s26, %s291_s27  }
   0xb   :  { %283 = dma.done.wait [#allocation4], 128  }
   0xc   :  { %284 = vsyncadd [#allocation4], 4294967168 }
   0xd   :  { %285 = dma.done.wait [#allocation7], 4096  }
   0xe   :  { %286 = vsyncadd [#allocation7], 4294963200  ;;  %v91_v0 = vld [vmem:[#allocation6 + $0x78] sm:$0xff]  ;;  %v90_v1 = vld [vmem:[#allocation6 + $0x70] sm:$0xff]  ;;  %s294_s11 = smov [#allocation9]   ;;  %s168_s15 = sshll.u32 %s348_s5, 4  ;;  %s169_s15 = int_to_ptr.hbm [resolvable:$true] %s168_s15 }
   0xf   :  { %96 = vmatpush.msra.mxu0 %v91_v0  ;;  %v89_v2 = vld [vmem:[#allocation6 + $0x68] sm:$0xff]  ;;  %v88_v3 = vld [vmem:[#allocation6 + $0x60] sm:$0xff]  ;;  %v133_v4 = vld [vmem:[#allocation8 + $0x78] sm:$0xff]  ;;  %s166_s12 = sshll.u32 %s294_s11, 4  ;;  %s167_s12 = int_to_ptr.vmem [resolvable:$true] %s166_s12 }
  0x10   :  { %v87_v5 = vld [vmem:[#allocation6 + $0x58] sm:$0xff]  ;;  %134 = vmatpush.msra.mxu1 %v133_v4  ;;  %v132_v6 = vld [vmem:[#allocation8 + $0x70] sm:$0xff]  ;;  %v131_v7 = vld [vmem:[#allocation8 + $0x68] sm:$0xff] }
  0x11   :  { %97 = vmatpush.msra.mxu0 %v90_v1  ;;  %v86_v8 = vld [vmem:[#allocation6 + $0x50] sm:$0xff]  ;;  %v130_v9 = vld [vmem:[#allocation8 + $0x60] sm:$0xff]  ;;  %v85_v10 = vld [vmem:[#allocation6 + $0x48] sm:$0xff] }
  0x12   :  { %135 = vmatpush.msra.mxu1 %v132_v6  ;;  %v129_v11 = vld [vmem:[#allocation8 + $0x58] sm:$0xff]  ;;  %v84_v12 = vld [vmem:[#allocation6 + $0x40] sm:$0xff]  ;;  %v128_v13 = vld [vmem:[#allocation8 + $0x50] sm:$0xff] }
  0x13   :  { %98 = vmatpush.msra.mxu0 %v89_v2  ;;  %v83_v14 = vld [vmem:[#allocation6 + $0x38] sm:$0xff]  ;;  %v127_v15 = vld [vmem:[#allocation8 + $0x48] sm:$0xff]  ;;  %v82_v16 = vld [vmem:[#allocation6 + $0x30] sm:$0xff] }
  0x14   :  { %136 = vmatpush.msra.mxu1 %v131_v7  ;;  %v126_v17 = vld [vmem:[#allocation8 + $0x40] sm:$0xff]  ;;  %v81_v18 = vld [vmem:[#allocation6 + $0x28] sm:$0xff]  ;;  %v125_v19 = vld [vmem:[#allocation8 + $0x38] sm:$0xff] }
  0x15   :  { %99 = vmatpush.msra.mxu0 %v88_v3  ;;  %v80_v20 = vld [vmem:[#allocation6 + $0x20] sm:$0xff]  ;;  %v124_v21 = vld [vmem:[#allocation8 + $0x30] sm:$0xff]  ;;  %v79_v22 = vld [vmem:[#allocation6 + $0x18] sm:$0xff] }
  0x16   :  { %137 = vmatpush.msra.mxu1 %v130_v9  ;;  %v123_v23 = vld [vmem:[#allocation8 + $0x28] sm:$0xff]  ;;  %v78_v24 = vld [vmem:[#allocation6 + $0x10] sm:$0xff]  ;;  %v122_v25 = vld [vmem:[#allocation8 + $0x20] sm:$0xff] }
  0x17   :  { %100 = vmatpush.msra.mxu0 %v87_v5  ;;  %v77_v26 = vld [vmem:[#allocation6 + $0x8] sm:$0xff]  ;;  %v121_v27 = vld [vmem:[#allocation8 + $0x18] sm:$0xff]  ;;  %v76_v28 = vld [vmem:[#allocation6] sm:$0xff] }
  0x18   :  { %138 = vmatpush.msra.mxu1 %v129_v11  ;;  %v75_v29 = vld [vmem:[#allocation3] sm:$0xff]  ;;  %v120_v30 = vld [vmem:[#allocation8 + $0x10] sm:$0xff]  ;;  %v119_v31 = vld [vmem:[#allocation8 + $0x8] sm:$0xff] }
  0x19   :  { %101 = vmatpush.msra.mxu0 %v86_v8  ;;  %v118_v32 = vld [vmem:[#allocation8] sm:$0xff]  ;;  %v185_v33 = vld [vmem:[%s345_s2] ss:$0 sm:$0xff] }
  0x1a   :  { %139 = vmatpush.msra.mxu1 %v128_v13  ;;  %v186_v37 = vld [vmem:[%s347_s4] ss:$0 sm:$0xff] }
  0x1b   :  { %102 = vmatpush.msra.mxu0 %v85_v10 }
  0x1c   :  { %140 = vmatpush.msra.mxu1 %v127_v15 }
  0x1d   :  { %103 = vmatpush.msra.mxu0 %v84_v12 }
  0x1e   :  { %141 = vmatpush.msra.mxu1 %v126_v17 }
  0x1f   :  { %104 = vmatpush.msra.mxu0 %v83_v14 }
  0x20   :  { %142 = vmatpush.msra.mxu1 %v125_v19 }
  0x21   :  { %105 = vmatpush.msra.mxu0 %v82_v16 }
  0x22   :  { %143 = vmatpush.msra.mxu1 %v124_v21 }
  0x23   :  { %106 = vmatpush.msra.mxu0 %v81_v18 }
  0x24   :  { %144 = vmatpush.msra.mxu1 %v123_v23 }
  0x25   :  { %107 = vmatpush.msra.mxu0 %v80_v20 }
  0x26   :  { %145 = vmatpush.msra.mxu1 %v122_v25 }
  0x27   :  { %108 = vmatpush.msra.mxu0 %v79_v22 }
  0x28   :  { %146 = vmatpush.msra.mxu1 %v121_v27 }
  0x29   :  { %109 = vmatpush.msra.mxu0 %v78_v24 }
  0x2a   :  { %147 = vmatpush.msra.mxu1 %v120_v30 }
  0x2b   :  { %110 = vmatpush.msra.mxu0 %v77_v26 }
  0x2c   :  { %148 = vmatpush.msra.mxu1 %v119_v31 }
  0x2d   :  { %111 = vmatpush.msra.mxu0 %v76_v28 }
  0x2e   :  { %112 = vmatmul.f32.vlgmr.msra.gmra.mxu0 %v75_v29  ;;  %149 = vmatpush.msra.mxu1 %v118_v32 }
  0xab   :  { %v113_v34 = vpop.f32.mrf.mxu0 }
  0xac   :  { %v114_v35 = vadd.f32 %v185_v33, %v113_v34 }
  0xae   :  { %v116_v36 = vmax.f32 %v114_v35, 0.0 }
  0xb0   :  { %150 = vmatmul.f32.vlgmr.msra.gmra.mxu1 %v116_v36 }
 0x12d   :  { %v151_v38 = vpop.f32.mrf.mxu1 }
 0x12e   :  { %v154_v39 = vadd.f32 %v186_v37, %v151_v38 }
 0x130   :  { %160 = vst [vmem:[#allocation9] sm:$0xff] %v154_v39 }
 0x131   :  { %171 = dma.vmem_to_hbm [thread:$0]  %s167_s12, 128, %s169_s15, [#allocation5]  }
 0x132   :  { %287 = dma.done.wait [#allocation5], 128  }
 0x133   :  { %288 = vsyncadd [#allocation5], 4294967168 }
 0x134   :  { %176 = vsyncpa [#allocation4], 1 }
 0x135   :  { %177 = vsyncpa [#allocation7], 1 }
 0x136   :  { %178 = vsyncpa [#allocation5], 1 }

</bundles_post_ra>
